<compile_context>
chip_gen: v7x
topology: tpu7x:2x2x1
jax: 0.10.0
libtpu: 0.0.40
codegen_flags: <defaults>
</compile_context>

<pallas_src>
import functools

import jax
import jax.numpy as jnp
from jax.experimental import pallas as pl
from jax.experimental.pallas import tpu as pltpu


def _round_up(x, m):
    return (x + m - 1) // m * m


def dqn_kernel(x_ref, w1_ref, b1_ref, w2_ref, b2_ref, w3_ref, b3_ref, o_ref):
    # bf16 operands into the MXU, f32 accumulation; bias add / ReLU on the
    # f32 accumulator. The x cast from f32 happens here (hidden under DMA).
    x = x_ref[...].astype(jnp.bfloat16)
    # l1 + ReLU
    h1 = jnp.dot(x, w1_ref[...], preferred_element_type=jnp.float32)
    h1 = jnp.maximum(h1 + b1_ref[...], 0.0)
    # l2 + ReLU
    h2 = jnp.dot(h1.astype(jnp.bfloat16), w2_ref[...],
                 preferred_element_type=jnp.float32)
    h2 = jnp.maximum(h2 + b2_ref[...], 0.0)
    # l3 (no activation) -> store only the real A action columns
    o = jnp.dot(h2.astype(jnp.bfloat16), w3_ref[...],
                preferred_element_type=jnp.float32) + b3_ref[...]
    o_ref[...] = o.astype(o_ref.dtype)


def prepare_params(params):
    """One-time packing (hoisted out of the per-call path).

    Weights -> bf16 stored (in, out); biases -> f32 stored (1, out)."""
    return {
        "w1": params["w1"].astype(jnp.bfloat16),
        "w2": params["w2"].astype(jnp.bfloat16),
        "w3": params["w3"].astype(jnp.bfloat16),
        "b1": params["b1"].astype(jnp.float32).reshape(1, -1),
        "b2": params["b2"].astype(jnp.float32).reshape(1, -1),
        "b3": params["b3"].astype(jnp.float32).reshape(1, -1),
    }


@functools.partial(jax.jit, static_argnames=("batch_tile",))
def dqn_forward(x, packed, batch_tile=4096):
    """x: (B, num_features) f32. packed: output of prepare_params().
    Returns (B, num_actions) f32 Q-values."""
    B, F = x.shape
    H = packed["w1"].shape[1]
    A = packed["w3"].shape[1]

    # ---- batch tile selection (static python on shapes) ----
    if B <= 512:
        TB = _round_up(B, 8)                    # single small tile
    else:
        half = -(-B // 2)                       # ceil(B/2): keep >=2 tiles (v7x dual-TC)
        TB = max(256, min(batch_tile, _round_up(half, 256)))
    grid = (pl.cdiv(B, TB),)                    # ragged last tile handled by Pallas masking

    flops = 2 * B * (F * H + H * H + H * A)
    bytes_accessed = (
        B * F * 4                                                    # x (f32, streamed)
        + 2 * (packed["w1"].size + packed["w2"].size + packed["w3"].size)  # bf16 weights
        + 4 * (packed["b1"].size + packed["b2"].size + packed["b3"].size)  # f32 biases
        + B * A * 4                                                  # f32 Q-values out
    )

    return pl.pallas_call(
        dqn_kernel,
        out_shape=jax.ShapeDtypeStruct((B, A), jnp.float32),
        grid=grid,
        in_specs=[
            pl.BlockSpec((TB, F), lambda i: (i, 0)),   # x: tiled on batch (double-buffered)
            pl.BlockSpec((F, H), lambda i: (0, 0)),    # w1: resident in VMEM
            pl.BlockSpec((1, H), lambda i: (0, 0)),    # b1: resident
            pl.BlockSpec((H, H), lambda i: (0, 0)),    # w2: resident
            pl.BlockSpec((1, H), lambda i: (0, 0)),    # b2: resident
            pl.BlockSpec((H, A), lambda i: (0, 0)),    # w3: resident
            pl.BlockSpec((1, A), lambda i: (0, 0)),    # b3: resident
        ],
        out_specs=pl.BlockSpec((TB, A), lambda i: (i, 0)),  # real action width only
        compiler_params=pltpu.CompilerParams(
            dimension_semantics=("parallel",),     # 2-TC split on v7x
        ),
        cost_estimate=pl.CostEstimate(
            flops=flops, bytes_accessed=bytes_accessed, transcendentals=0),
    )(x, packed["w1"], packed["b1"], packed["w2"], packed["b2"],
      packed["w3"], packed["b3"])


def init_dqn_params(key, num_features, num_actions):
    """Deterministic init mimicking torch.nn.Linear default:
    U(-1/sqrt(fan_in), 1/sqrt(fan_in)). Weights stored (in, out)."""
    hidden = num_features * 2
    keys = jax.random.split(key, 6)

    def linear(kw, kb, fan_in, fan_out):
        bound = 1.0 / jnp.sqrt(jnp.float32(fan_in))
        w = jax.random.uniform(kw, (fan_in, fan_out), jnp.float32, -bound, bound)
        b = jax.random.uniform(kb, (1, fan_out), jnp.float32, -bound, bound)
        return w, b

    w1, b1 = linear(keys[0], keys[1], num_features, hidden)
    w2, b2 = linear(keys[2], keys[3], hidden, hidden)
    w3, b3 = linear(keys[4], keys[5], hidden, num_actions)
    return {"w1": w1, "b1": b1, "w2": w2, "b2": b2, "w3": w3, "b3": b3}


def dqn_reference(x, params):
    """Pure-JAX reference with the same bf16-operand / f32-accumulation numerics.
    (Note: bf16 operands deviate O(1e-2) from PyTorch f32 numerics — fine for
    acting/inference; do not use for f32-exact Q-target comparisons.)"""
    xb = x.astype(jnp.bfloat16)
    h1 = jax.nn.relu(
        jnp.dot(xb, params["w1"].astype(jnp.bfloat16),
                preferred_element_type=jnp.float32) + params["b1"])
    h2 = jax.nn.relu(
        jnp.dot(h1.astype(jnp.bfloat16), params["w2"].astype(jnp.bfloat16),
                preferred_element_type=jnp.float32) + params["b2"])
    return jnp.dot(h2.astype(jnp.bfloat16), params["w3"].astype(jnp.bfloat16),
                   preferred_element_type=jnp.float32) + params["b3"]


if __name__ == "__main__":
    key = jax.random.PRNGKey(0)
    k_x, k_p = jax.random.split(key)

    batch = 8
    num_features = 16          # state_space
    num_actions = 4            # action_space
    # hidden = 2 * num_features = 32 (per module __init__)

    params = init_dqn_params(k_p, num_features, num_actions)
    packed = prepare_params(params)            # one-time weight packing

    # Small batch (single tile).
    x = jax.random.normal(k_x, (batch, num_features), jnp.float32)
    out = jax.block_until_ready(dqn_forward(x, packed))
    ref = dqn_reference(x, params)
    assert out.shape == (batch, num_actions)
    assert jnp.allclose(out, ref, atol=2e-2, rtol=2e-2), "mismatch vs JAX reference"

    # Larger ragged batch: 2-step grid (512 + partial 488-row tile).
    x_big = jax.random.normal(k_x, (1000, num_features), jnp.float32)
    out_big = jax.block_until_ready(dqn_forward(x_big, packed))
    ref_big = dqn_reference(x_big, params)
    assert out_big.shape == (1000, num_actions)
    assert jnp.allclose(out_big, ref_big, atol=2e-2, rtol=2e-2), "mismatch (large batch)"

    # Tiny ragged batch (single masked partial tile, B not multiple of 8).
    x_tiny = jax.random.normal(k_x, (3, num_features), jnp.float32)
    out_tiny = jax.block_until_ready(dqn_forward(x_tiny, packed))
    ref_tiny = dqn_reference(x_tiny, params)
    assert out_tiny.shape == (3, num_actions)
    assert jnp.allclose(out_tiny, ref_tiny, atol=2e-2, rtol=2e-2), "mismatch (tiny batch)"

    print("KERNEL_OK")
</pallas_src>

<mosaic_0001>
module attributes {stable_mosaic.version = 11 : i64} {
  func.func @dqn_kernel(%arg0: i32, %arg1: memref<8x16xf32, #tpu.memory_space<vmem>>, %arg2: memref<16x32xbf16, #tpu.memory_space<vmem>>, %arg3: memref<1x32xf32, #tpu.memory_space<vmem>>, %arg4: memref<32x32xbf16, #tpu.memory_space<vmem>>, %arg5: memref<1x32xf32, #tpu.memory_space<vmem>>, %arg6: memref<32x4xbf16, #tpu.memory_space<vmem>>, %arg7: memref<1x4xf32, #tpu.memory_space<vmem>>, %arg8: memref<8x4xf32, #tpu.memory_space<vmem>>) attributes {dimension_semantics = [#tpu.dimension_semantics<parallel>], iteration_bounds = array<i64: 1>, scalar_prefetch = 0 : i64, scratch_operands = 0 : i64, tpu.core_type = #tpu.core_type<tc>, window_params = [{transform_indices = @transform_0, window_bounds = array<i64: 8, 16>}, {pipeline_mode = #tpu.pipeline_mode<synchronous>, transform_indices = @transform_1, window_bounds = array<i64: 16, 32>}, {pipeline_mode = #tpu.pipeline_mode<synchronous>, transform_indices = @transform_2, window_bounds = array<i64: 1, 32>}, {pipeline_mode = #tpu.pipeline_mode<synchronous>, transform_indices = @transform_3, window_bounds = array<i64: 32, 32>}, {pipeline_mode = #tpu.pipeline_mode<synchronous>, transform_indices = @transform_4, window_bounds = array<i64: 1, 32>}, {pipeline_mode = #tpu.pipeline_mode<synchronous>, transform_indices = @transform_5, window_bounds = array<i64: 32, 4>}, {pipeline_mode = #tpu.pipeline_mode<synchronous>, transform_indices = @transform_6, window_bounds = array<i64: 1, 4>}, {transform_indices = @transform_7, window_bounds = array<i64: 8, 4>}]} {
    %c0 = arith.constant 0 : index
    %c0_0 = arith.constant 0 : index
    %0 = vector.load %arg1[%c0, %c0_0] : memref<8x16xf32, #tpu.memory_space<vmem>>, vector<8x16xf32>
    %1 = arith.truncf %0 : vector<8x16xf32> to vector<8x16xbf16>
    %c0_1 = arith.constant 0 : index
    %c0_2 = arith.constant 0 : index
    %2 = vector.load %arg2[%c0_1, %c0_2] : memref<16x32xbf16, #tpu.memory_space<vmem>>, vector<16x32xbf16>
    %cst = arith.constant dense<0.000000e+00> : vector<8x32xf32>
    %3 = tpu.matmul %1, %2, %cst {dimension_numbers = #tpu.dot_dimension_numbers<[1], [0], [0], [1], [0, 0, 1, 1], [], []>} : vector<8x16xbf16>, vector<16x32xbf16>, vector<8x32xf32> -> vector<8x32xf32>
    %c0_3 = arith.constant 0 : index
    %c0_4 = arith.constant 0 : index
    %4 = vector.load %arg3[%c0_3, %c0_4] : memref<1x32xf32, #tpu.memory_space<vmem>>, vector<1x32xf32>
    %5 = vector.broadcast %4 : vector<1x32xf32> to vector<8x32xf32>
    %6 = arith.addf %3, %5 : vector<8x32xf32>
    %cst_5 = arith.constant 0.000000e+00 : f32
    %7 = vector.broadcast %cst_5 : f32 to vector<8x32xf32>
    %8 = arith.maximumf %6, %7 : vector<8x32xf32>
    %9 = arith.truncf %8 : vector<8x32xf32> to vector<8x32xbf16>
    %c0_6 = arith.constant 0 : index
    %c0_7 = arith.constant 0 : index
    %10 = vector.load %arg4[%c0_6, %c0_7] : memref<32x32xbf16, #tpu.memory_space<vmem>>, vector<32x32xbf16>
    %cst_8 = arith.constant dense<0.000000e+00> : vector<8x32xf32>
    %11 = tpu.matmul %9, %10, %cst_8 {dimension_numbers = #tpu.dot_dimension_numbers<[1], [0], [0], [1], [0, 0, 1, 1], [], []>} : vector<8x32xbf16>, vector<32x32xbf16>, vector<8x32xf32> -> vector<8x32xf32>
    %c0_9 = arith.constant 0 : index
    %c0_10 = arith.constant 0 : index
    %12 = vector.load %arg5[%c0_9, %c0_10] : memref<1x32xf32, #tpu.memory_space<vmem>>, vector<1x32xf32>
    %13 = vector.broadcast %12 : vector<1x32xf32> to vector<8x32xf32>
    %14 = arith.addf %11, %13 : vector<8x32xf32>
    %cst_11 = arith.constant 0.000000e+00 : f32
    %15 = vector.broadcast %cst_11 : f32 to vector<8x32xf32>
    %16 = arith.maximumf %14, %15 : vector<8x32xf32>
    %17 = arith.truncf %16 : vector<8x32xf32> to vector<8x32xbf16>
    %c0_12 = arith.constant 0 : index
    %c0_13 = arith.constant 0 : index
    %18 = vector.load %arg6[%c0_12, %c0_13] : memref<32x4xbf16, #tpu.memory_space<vmem>>, vector<32x4xbf16>
    %cst_14 = arith.constant dense<0.000000e+00> : vector<8x4xf32>
    %19 = tpu.matmul %17, %18, %cst_14 {dimension_numbers = #tpu.dot_dimension_numbers<[1], [0], [0], [1], [0, 0, 1, 1], [], []>} : vector<8x32xbf16>, vector<32x4xbf16>, vector<8x4xf32> -> vector<8x4xf32>
    %c0_15 = arith.constant 0 : index
    %c0_16 = arith.constant 0 : index
    %20 = vector.load %arg7[%c0_15, %c0_16] : memref<1x4xf32, #tpu.memory_space<vmem>>, vector<1x4xf32>
    %21 = vector.broadcast %20 : vector<1x4xf32> to vector<8x4xf32>
    %22 = arith.addf %19, %21 : vector<8x4xf32>
    %c0_17 = arith.constant 0 : index
    %c0_18 = arith.constant 0 : index
    %23 = vector.load %arg8[%c0_17, %c0_18] : memref<8x4xf32, #tpu.memory_space<vmem>>, vector<8x4xf32>
    tpu.vector_store %arg8[%c0_17, %c0_18], %22 {strides = array<i32>} : memref<8x4xf32, #tpu.memory_space<vmem>>, vector<8x4xf32>,
    return
  }
  func.func @transform_0(%arg0: i32) -> (i32, i32) {
    %c0_i32 = arith.constant 0 : i32
    %c0_i32_0 = arith.constant 0 : i32
    return %arg0, %c0_i32 : i32, i32
  }
  func.func @transform_1(%arg0: i32) -> (i32, i32) {
    %c0_i32 = arith.constant 0 : i32
    %c0_i32_0 = arith.constant 0 : i32
    %c0_i32_1 = arith.constant 0 : i32
    return %c0_i32, %c0_i32_0 : i32, i32
  }
  func.func @transform_2(%arg0: i32) -> (i32, i32) {
    %c0_i32 = arith.constant 0 : i32
    %c0_i32_0 = arith.constant 0 : i32
    %c0_i32_1 = arith.constant 0 : i32
    return %c0_i32, %c0_i32_0 : i32, i32
  }
  func.func @transform_3(%arg0: i32) -> (i32, i32) {
    %c0_i32 = arith.constant 0 : i32
    %c0_i32_0 = arith.constant 0 : i32
    %c0_i32_1 = arith.constant 0 : i32
    return %c0_i32, %c0_i32_0 : i32, i32
  }
  func.func @transform_4(%arg0: i32) -> (i32, i32) {
    %c0_i32 = arith.constant 0 : i32
    %c0_i32_0 = arith.constant 0 : i32
    %c0_i32_1 = arith.constant 0 : i32
    return %c0_i32, %c0_i32_0 : i32, i32
  }
  func.func @transform_5(%arg0: i32) -> (i32, i32) {
    %c0_i32 = arith.constant 0 : i32
    %c0_i32_0 = arith.constant 0 : i32
    %c0_i32_1 = arith.constant 0 : i32
    return %c0_i32, %c0_i32_0 : i32, i32
  }
  func.func @transform_6(%arg0: i32) -> (i32, i32) {
    %c0_i32 = arith.constant 0 : i32
    %c0_i32_0 = arith.constant 0 : i32
    %c0_i32_1 = arith.constant 0 : i32
    return %c0_i32, %c0_i32_0 : i32, i32
  }
  func.func @transform_7(%arg0: i32) -> (i32, i32) {
    %c0_i32 = arith.constant 0 : i32
    %c0_i32_0 = arith.constant 0 : i32
    return %arg0, %c0_i32 : i32, i32
  }
}

</mosaic_0001>

<bundles_post_ra>
// kernel: dqn_forward.1
= control target key start
LH: loop header
LB: loop body
LE: loop exit
PB: predicated region body
PF: predicated region fallthrough
CT: control target
= control target key end

     0   :  { %12 = vsyncpa [#allocation3], 0  ;;  %s447_s0 = inlined_call_operand.vmem [shape: f32[8,16], index: 0, kind: input, shape index: {}]   ;;  %s448_s1 = inlined_call_operand.vmem [shape: bf16[16,32], index: 1, kind: input, shape index: {}]   ;;  %s449_s2 = inlined_call_operand.vmem [shape: f32[1,32], index: 2, kind: input, shape index: {}]   ;;  %s450_s3 = inlined_call_operand.vmem [shape: bf16[32,32], index: 3, kind: input, shape index: {}]   ;;  %s451_s4 = inlined_call_operand.hbm [shape: f32[1,32], index: 4, kind: input, shape index: {}]   ;;  %s452_s5 = inlined_call_operand.vmem [shape: bf16[32,4], index: 5, kind: input, shape index: {}]   ;;  %s453_s6 = inlined_call_operand.hbm [shape: f32[1,4], index: 6, kind: input, shape index: {}]   ;;  %s454_s7 = inlined_call_operand.vmem [shape: f32[8,4], index: 7, kind: output, shape index: {}]  }
   0x1   :  { %13 = vsyncpa [#allocation5], 0  ;;  %s355_s24 = smov [#allocation2]   ;;  %s356_s26 = smov [#allocation4]  }
   0x2   :  { %s28_s25 = sshll.u32 %s355_s24, 4  ;;  %s40_s27 = sshll.u32 %s356_s26, 4  ;;  %s29_s25 = int_to_ptr.vmem [resolvable:$true] %s28_s25  ;;  %s41_s27 = int_to_ptr.vmem [resolvable:$true] %s40_s27 }
   0x3   :  { %s307_s30 = scalar_lea.hbm %s451_s4, 16 }
   0x4   :  { %p308_p0 = scmp.ne.s32.totalorder %s451_s4, %s307_s30  ;;  %p311_p1 = scmp.lt.u32.totalorder %s307_s30, %s451_s4 }
   0x6   :  { %p313_p2 = pnand %p311_p1, %p308_p0 }
   0x8   :  { %316 = shalt.err (!%p313_p2)
}
   0x9   :  { %s317_s12 = scalar_lea.vmem %s29_s25, 16  ;;  %s321_s13 = scalar_lea.vmem %s29_s25, 32 }
   0xa   :  { %p318_p3 = scmp.ne.s32.totalorder %s29_s25, %s317_s12  ;;  %p322_p4 = scmp.lt.s32.totalorder %s29_s25, %s29_s25 }
   0xb   :  { %p323_p5 = scmp.lt.s32.totalorder %s321_s13, %s317_s12 }
   0xd   :  { %p324_p6 = por %p323_p5, %p322_p4 }
   0xf   :  { %p325_p7 = pnand %p324_p6, %p318_p3 }
  0x11   :  { %328 = shalt.err (!%p325_p7)
}
  0x12   :  { %31 = dma.hbm_to_vmem [thread:$0]  %s451_s4, 16, %s29_s25, [#allocation3]  }
  0x13   :  { %s329_s18 = scalar_lea.hbm %s453_s6, 16 }
  0x14   :  { %p330_p8 = scmp.ne.s32.totalorder %s453_s6, %s329_s18  ;;  %p333_p9 = scmp.lt.u32.totalorder %s329_s18, %s453_s6 }
  0x16   :  { %p335_p10 = pnand %p333_p9, %p330_p8 }
  0x18   :  { %338 = shalt.err (!%p335_p10)
}
  0x19   :  { %s339_s23 = scalar_lea.vmem %s41_s27, 16  ;;  %s343_s24 = scalar_lea.vmem %s41_s27, 32 }
  0x1a   :  { %p340_p11 = scmp.ne.s32.totalorder %s41_s27, %s339_s23  ;;  %p344_p12 = scmp.lt.s32.totalorder %s41_s27, %s41_s27 }
  0x1b   :  { %p345_p13 = scmp.lt.s32.totalorder %s343_s24, %s339_s23 }
  0x1d   :  { %p346_p0 = por %p345_p13, %p344_p12 }
  0x1f   :  { %p347_p1 = pnand %p346_p0, %p340_p11 }
  0x21   :  { %350 = shalt.err (!%p347_p1)
}
  0x22   :  { %43 = dma.hbm_to_vmem [thread:$0]  %s453_s6, 16, %s41_s27, [#allocation5]  }
  0x23   :  { %351 = dma.done.wait [#allocation3], 16  }
  0x24   :  { %352 = vsyncadd [#allocation3], 4294967280 }
  0x25   :  { %353 = dma.done.wait [#allocation5], 16  }
  0x26   :  { %354 = vsyncadd [#allocation5], 4294967280  ;;  %v357_v0 = vmov 0.0   ;;  %vm358_vm0 = vmmov 0   ;;  %v302_v1 = vld [vmem:[%s448_s1] sm:$0xff]   ;;  %vm68_vm1 = vcmask 130048  }
  0x27   :  { %276 = vmatprep.subr.bf16.mxu0 %v357_v0  ;;  %278 = vmatprep.mubr.msk.bf16.mxu0 %vm358_vm0, %v357_v0  ;;  %v51_v2 = vld [vmem:[%s447_s0] sm:$0xff]  ;;  %v304_v5 = vld [vmem:[%s450_s3 + $0x8] sm:$0xff]   ;;  %vm137_vm2 = vcmask 261120   ;;  %vm249_vm3 = vcmask 31744  }
  0x28   :  { %282 = vmatprep.subr.bf16.mxu1 %v357_v0  ;;  %286 = vmatprep.mubr.msk.bf16.mxu1 %vm358_vm0, %v357_v0  ;;  %v52_v3 = vpack.c.bf16 %v51_v2, %v51_v2  ;;  %v303_v4 = vld [vmem:[%s450_s3] sm:$0xff]   ;;  %v306_v15 = vld [vmem:[%s452_s5 + $0x8] sm:$0xff]  }
  0x29   :  { %277 = vmatpush3.bf16.msra.mxu0 %v302_v1  ;;  %283 = vmatpush3.bf16.msra.mxu1 %v303_v4  ;;  %v305_v6 = vld [vmem:[%s452_s5] sm:$0xff]  }
  0x2a   :  { %290 = vmatprep.subr.bf16.mxu0 %v357_v0  ;;  %284 = vmatprep.subr.bf16.mxu1 %v357_v0  ;;  %v257_v7 = vld [vmem:[%s449_s2] ss:$0 sm:$0xff]  ;;  %v264_v24 = vld [vmem:[#allocation4] ss:$0 sm:$0xff] }
  0x2b   :  { %v260_v16 = vld [vmem:[#allocation2] ss:$0 sm:$0xff] }
  0x2c   :  { %279 = vmatmul.mubr.msk.bf16.vlgmr.msra.gmra.mrb[0].mxu0 %vm68_vm1, %v52_v3 }
  0x2d   :  { %294 = vmatprep.mubr.msk.bf16.mxu0 %vm358_vm0, %v357_v0  ;;  %285 = vmatpush3.bf16.msra.mxu1 %v304_v5 }
  0x2e   :  { %291 = vmatpush3.bf16.msra.mxu0 %v305_v6 }
  0x2f   :  { %292 = vmatprep.subr.bf16.mxu0 %v357_v0 }
  0x32   :  { %293 = vmatpush3.bf16.msra.mxu0 %v306_v15 }
  0xff   :  { %v106_v8 = vpop.f32.mrb[0].mxu0 }
 0x100   :  { %v107_v9 = vadd.f32 %v257_v7, %v106_v8  ;;  %v280_v10 = vpop.f32.mrb[1].mxu0 }
 0x101   :  { %v109_v11 = vpop.f32.mrb[2].mxu0 }
 0x102   :  { %v112_v12 = vmax.f32 %v107_v9, 0.0  ;;  %v281_v13 = vpop.f32.mrb[3].mxu0 }
 0x104   :  { %v113_v14 = vpack.c.bf16 %v112_v12, %v112_v12 }
 0x106   :  { %287 = vmatmul.mubr.msk.bf16.vlgmr.msra.gmra.mrb[0].mxu1 %vm137_vm2, %v113_v14 }
 0x1d9   :  { %v175_v17 = vpop.f32.mrb[0].mxu1 }
 0x1da   :  { %v176_v18 = vadd.f32 %v260_v16, %v175_v17  ;;  %v288_v19 = vpop.f32.mrb[1].mxu1 }
 0x1db   :  { %v178_v20 = vpop.f32.mrb[2].mxu1 }
 0x1dc   :  { %v181_v21 = vmax.f32 %v176_v18, 0.0  ;;  %v289_v22 = vpop.f32.mrb[3].mxu1 }
 0x1de   :  { %v182_v23 = vpack.c.bf16 %v181_v21, %v181_v21 }
 0x1e0   :  { %295 = vmatmul.mubr.msk.bf16.vlgmr.msra.gmra.mrb[4].mxu0 %vm137_vm2, %v182_v23 }
 0x2b3   :  { %v243_v25 = vpop.f32.mrb[4].mxu0 }
 0x2b4   :  { %v244_v26 = vadd.f32 %v264_v24, %v243_v25  ;;  %v296_v27 = vpop.f32.mrb[5].mxu0 }
 0x2b5   :  { %v246_v28 = vpop.f32.mrb[6].mxu0 }
 0x2b6   :  { %250 = vst.msk [vmem:[%s454_s7] sm:$0xff] %vm249_vm3, %v244_v26  ;;  %v297_v29 = vpop.f32.mrb[7].mxu0 }
 0x2b7   :  { %255 = vsyncpa [#allocation3], 1 }
 0x2b8   :  { %256 = vsyncpa [#allocation5], 1 }

</bundles_post_ra>
